<compile_context>
chip_gen: v6e
topology: v6e:2x2x1
jax: 0.10.0
libtpu: 0.0.40
codegen_flags: <defaults>
</compile_context>

<pallas_src>
import math

import jax
import jax.numpy as jnp
import numpy as np
from jax.experimental import pallas as pl
from jax.experimental.pallas import tpu as pltpu  # noqa: F401


def _make_kernel(num_heads: int, head_dim: int):
    H, hd = num_heads, head_dim

    def kernel(tgt_ref, qpos_ref, mem_ref, pos_ref, mask_ref, w_ref, b_ref, out_ref):
        # b_ref rows: 0=bq(scaled) 1=bk 2=bv 3=bo 4=ln_gamma 5=ln_beta
        b_all = b_ref[...]                               # (6, E)

        # Batch is already folded into rows host-side.
        q_in = tgt_ref[...] + qpos_ref[...]              # (B*L, E)  q = tgt + query_pos
        k_in = mem_ref[...] + pos_ref[...]               # (B*S, E)  k = memory + pos
        v_in = mem_ref[...]                              # (B*S, E)  v = memory

        # Full-width projections: one (rows, E) @ (E, E) MXU push each.
        # 1/sqrt(head_dim) is folded into w_q / b_q in the wrapper.
        q2 = jnp.dot(q_in, w_ref[0], preferred_element_type=jnp.float32) + b_all[0:1]
        k2 = jnp.dot(k_in, w_ref[1], preferred_element_type=jnp.float32) + b_all[1:2]
        v2 = jnp.dot(v_in, w_ref[2], preferred_element_type=jnp.float32) + b_all[2:3]

        mask = mask_ref[...]                             # (B*L, B*S) block-diag additive
        wo = w_ref[3]                                    # (E, E) output projection

        # Per-head attention.  Heads are static hd-lane slices of the projected
        # activations; the batch rides along in the row/col axes and cross-batch
        # scores are killed by the block-diagonal mask (exp underflows to exactly
        # 0), so the folded-batch softmax equals the per-batch softmax in f32.
        o = b_all[3:4]                                   # (1, E) bias, start of accumulation
        for h in range(H):
            lo = h * hd
            qh = q2[:, lo:lo + hd]                       # (B*L, hd)
            kh = k2[:, lo:lo + hd]                       # (B*S, hd)
            vh = v2[:, lo:lo + hd]                       # (B*S, hd)

            # contract the head-feature dim of both operands directly (no K transpose)
            s = jnp.einsum('rd,td->rt', qh, kh,
                           preferred_element_type=jnp.float32)    # (B*L, B*S)
            s = s + mask

            m = jnp.max(s, axis=-1, keepdims=True)
            p = jnp.exp(s - m)
            denom = jnp.sum(p, axis=-1, keepdims=True)
            # exact divide (tiny (rows,1) array; keeps strict f32-level accuracy)
            ctx = jnp.dot(p, vh, preferred_element_type=jnp.float32) / denom

            # fused output projection: accumulate this head's block of Wo directly,
            # no (H, L, E) intermediate slab and no cross-slab reduction.
            o = o + jnp.dot(ctx, wo[lo:lo + hd, :],
                            preferred_element_type=jnp.float32)   # (B*L, E)

        # LayerNorm over the embedding dim (torch default eps=1e-5); the module
        # applies norm(attn_output) with no residual connection.
        mu = jnp.mean(o, axis=-1, keepdims=True)
        d = o - mu
        var = jnp.mean(d * d, axis=-1, keepdims=True)
        normed = d * jax.lax.rsqrt(var + 1e-5)
        out_ref[...] = normed * b_all[4:5] + b_all[5:6]

    return kernel


def cross_attention_layer(tgt, memory, attn_mask, key_padding_mask,
                          pos, query_pos, params, num_heads):
    B, L, E = tgt.shape
    S = memory.shape[1]
    H = num_heads
    hd = E // H
    scale = 1.0 / math.sqrt(hd)

    # ---- host-side parameter packing (layout plumbing, 16 inputs -> 7) ----
    w_in = params["in_proj_weight"]            # (3E, E), torch (out, in) layout
    b_in = params["in_proj_bias"]              # (3E,)
    w_all = jnp.stack([w_in[:E].T * scale,             # Wq, scale folded in
                       w_in[E:2 * E].T,                # Wk
                       w_in[2 * E:].T,                 # Wv
                       params["out_proj_weight"].T],   # Wo
                      axis=0)                          # (4, E, E), "x @ W" layout
    b_all = jnp.stack([b_in[:E] * scale,               # bq, scale folded in
                       b_in[E:2 * E],
                       b_in[2 * E:],
                       params["out_proj_bias"],
                       params["ln_weight"],
                       params["ln_bias"]], axis=0)     # (6, E)

    # ---- one combined additive mask, block-diagonal over batch: (B*L, B*S) ----
    # Diagonal blocks: attn_mask + key-padding mask (PyTorch bool True = ignore).
    # Off-diagonal (cross-batch) blocks: -1e30, so exp() underflows to exactly 0.
    kpm_add = jnp.where(key_padding_mask, jnp.float32(-1e9), jnp.float32(0.0))  # (B, S)
    diag = attn_mask[None, :, :] + kpm_add[:, None, :]                          # (B, L, S)
    same_b = jnp.arange(B)[:, None] == jnp.arange(B)[None, :]                   # (B, B)
    big_mask = jnp.where(same_b[:, None, :, None], diag[:, :, None, :],
                         jnp.float32(-1e30)).reshape(B * L, B * S)

    kernel = _make_kernel(H, hd)

    # Single kernel step (no grid): everything stays resident in VMEM, the fixed
    # per-step cost and prologue/epilogue are paid once, and no weight DMA is
    # duplicated across TensorCores.
    out2 = pl.pallas_call(
        kernel,
        out_shape=jax.ShapeDtypeStruct((B * L, E), jnp.float32),
    )(tgt.reshape(B * L, E), query_pos.reshape(B * L, E),
      memory.reshape(B * S, E), pos.reshape(B * S, E),
      big_mask, w_all, b_all)
    return out2.reshape(B, L, E)


def reference(tgt, memory, attn_mask, key_padding_mask, pos, query_pos, params, num_heads):
    """Pure-JAX reference mirroring torch.nn.MultiheadAttention + LayerNorm."""
    B, L, E = tgt.shape
    S = memory.shape[1]
    hd = E // num_heads
    w, b = params["in_proj_weight"], params["in_proj_bias"]
    q = (tgt + query_pos) @ w[:E].T + b[:E]
    k = (memory + pos) @ w[E:2 * E].T + b[E:2 * E]
    v = memory @ w[2 * E:].T + b[2 * E:]
    q = q.reshape(B, L, num_heads, hd).transpose(0, 2, 1, 3)
    k = k.reshape(B, S, num_heads, hd).transpose(0, 2, 1, 3)
    v = v.reshape(B, S, num_heads, hd).transpose(0, 2, 1, 3)
    s = jnp.einsum("bhld,bhsd->bhls", q, k) / math.sqrt(hd)
    s = s + attn_mask[None, None]
    s = s + jnp.where(key_padding_mask, -1e9, 0.0)[:, None, None, :]
    p = jax.nn.softmax(s, axis=-1)
    o = jnp.einsum("bhls,bhsd->bhld", p, v).transpose(0, 2, 1, 3).reshape(B, L, E)
    o = o @ params["out_proj_weight"].T + params["out_proj_bias"]
    mu = o.mean(-1, keepdims=True)
    var = ((o - mu) ** 2).mean(-1, keepdims=True)
    return (o - mu) / jnp.sqrt(var + 1e-5) * params["ln_weight"] + params["ln_bias"]


if __name__ == "__main__":
    B, L, S, E, H = 2, 8, 16, 32, 4   # batch, tgt len, memory len, embed_dim, heads

    key = jax.random.PRNGKey(0)
    keys = jax.random.split(key, 10)

    def xavier(k, shape):
        fan_in, fan_out = shape[-1], shape[-2]
        lim = math.sqrt(6.0 / (fan_in + fan_out))
        return jax.random.uniform(k, shape, jnp.float32, -lim, lim)

    params = {
        "in_proj_weight": xavier(keys[0], (3 * E, E)),
        "in_proj_bias": jnp.zeros((3 * E,), jnp.float32),
        "out_proj_weight": xavier(keys[1], (E, E)),
        "out_proj_bias": jnp.zeros((E,), jnp.float32),
        "ln_weight": jnp.ones((E,), jnp.float32),
        "ln_bias": jnp.zeros((E,), jnp.float32),
    }

    tgt = jax.random.normal(keys[2], (B, L, E), jnp.float32)
    memory = jax.random.normal(keys[3], (B, S, E), jnp.float32)
    query_pos = jax.random.normal(keys[4], (B, L, E), jnp.float32)
    pos = jax.random.normal(keys[5], (B, S, E), jnp.float32)

    # float (additive) attention mask with a few blocked positions
    attn_mask = jnp.where(
        jax.random.uniform(keys[6], (L, S)) < 0.2, jnp.float32(-1e9), jnp.float32(0.0))
    # boolean key padding mask: batch 1 pads the last 4 memory positions
    key_padding_mask = jnp.zeros((B, S), dtype=bool).at[1, S - 4:].set(True)

    out = cross_attention_layer(tgt, memory, attn_mask, key_padding_mask,
                                pos, query_pos, params, H)
    out = jax.block_until_ready(out)

    ref = reference(tgt, memory, attn_mask, key_padding_mask,
                    pos, query_pos, params, H)
    np.testing.assert_allclose(np.asarray(out), np.asarray(ref), rtol=2e-4, atol=2e-4)

    print("KERNEL_OK")
</pallas_src>

<mosaic_0001>
module attributes {stable_mosaic.version = 11 : i64} {
  func.func @kernel(%arg0: memref<16x32xf32, #tpu.memory_space<vmem>>, %arg1: memref<16x32xf32, #tpu.memory_space<vmem>>, %arg2: memref<32x32xf32, #tpu.memory_space<vmem>>, %arg3: memref<32x32xf32, #tpu.memory_space<vmem>>, %arg4: memref<16x32xf32, #tpu.memory_space<vmem>>, %arg5: memref<4x32x32xf32, #tpu.memory_space<vmem>>, %arg6: memref<6x32xf32, #tpu.memory_space<vmem>>, %arg7: memref<16x32xf32, #tpu.memory_space<vmem>>) attributes {dimension_semantics = [], scalar_prefetch = 0 : i64, scratch_operands = 0 : i64, tpu.core_type = #tpu.core_type<tc>} {
    %c0 = arith.constant 0 : index
    %c0_0 = arith.constant 0 : index
    %0 = vector.load %arg6[%c0, %c0_0] : memref<6x32xf32, #tpu.memory_space<vmem>>, vector<6x32xf32>
    %c0_1 = arith.constant 0 : index
    %c0_2 = arith.constant 0 : index
    %1 = vector.load %arg0[%c0_1, %c0_2] : memref<16x32xf32, #tpu.memory_space<vmem>>, vector<16x32xf32>
    %c0_3 = arith.constant 0 : index
    %c0_4 = arith.constant 0 : index
    %2 = vector.load %arg1[%c0_3, %c0_4] : memref<16x32xf32, #tpu.memory_space<vmem>>, vector<16x32xf32>
    %3 = arith.addf %1, %2 : vector<16x32xf32>
    %c0_5 = arith.constant 0 : index
    %c0_6 = arith.constant 0 : index
    %4 = vector.load %arg2[%c0_5, %c0_6] : memref<32x32xf32, #tpu.memory_space<vmem>>, vector<32x32xf32>
    %c0_7 = arith.constant 0 : index
    %c0_8 = arith.constant 0 : index
    %5 = vector.load %arg3[%c0_7, %c0_8] : memref<32x32xf32, #tpu.memory_space<vmem>>, vector<32x32xf32>
    %6 = arith.addf %4, %5 : vector<32x32xf32>
    %c0_9 = arith.constant 0 : index
    %c0_10 = arith.constant 0 : index
    %7 = vector.load %arg2[%c0_9, %c0_10] : memref<32x32xf32, #tpu.memory_space<vmem>>, vector<32x32xf32>
    %c0_11 = arith.constant 0 : index
    %c0_12 = arith.constant 0 : index
    %c0_13 = arith.constant 0 : index
    %8 = vector.load %arg5[%c0_11, %c0_12, %c0_13] : memref<4x32x32xf32, #tpu.memory_space<vmem>>, vector<1x32x32xf32>
    %9 = vector.shape_cast %8 : vector<1x32x32xf32> to vector<32x32xf32>
    %cst = arith.constant dense<0.000000e+00> : vector<16x32xf32>
    %10 = tpu.matmul %3, %9, %cst {dimension_numbers = #tpu.dot_dimension_numbers<[1], [0], [0], [1], [0, 0, 1, 1], [], []>} : vector<16x32xf32>, vector<32x32xf32>, vector<16x32xf32> -> vector<16x32xf32>
    %11 = vector.extract_strided_slice %0 {offsets = [0, 0], sizes = [1, 32], strides = [1, 1]} : vector<6x32xf32> to vector<1x32xf32>
    %12 = vector.broadcast %11 : vector<1x32xf32> to vector<16x32xf32>
    %13 = arith.addf %10, %12 : vector<16x32xf32>
    %c1 = arith.constant 1 : index
    %c0_14 = arith.constant 0 : index
    %c0_15 = arith.constant 0 : index
    %14 = vector.load %arg5[%c1, %c0_14, %c0_15] : memref<4x32x32xf32, #tpu.memory_space<vmem>>, vector<1x32x32xf32>
    %15 = vector.shape_cast %14 : vector<1x32x32xf32> to vector<32x32xf32>
    %cst_16 = arith.constant dense<0.000000e+00> : vector<32x32xf32>
    %16 = tpu.matmul %6, %15, %cst_16 {dimension_numbers = #tpu.dot_dimension_numbers<[1], [0], [0], [1], [0, 0, 1, 1], [], []>} : vector<32x32xf32>, vector<32x32xf32>, vector<32x32xf32> -> vector<32x32xf32>
    %17 = vector.extract_strided_slice %0 {offsets = [1, 0], sizes = [1, 32], strides = [1, 1]} : vector<6x32xf32> to vector<1x32xf32>
    %18 = vector.broadcast %17 : vector<1x32xf32> to vector<32x32xf32>
    %19 = arith.addf %16, %18 : vector<32x32xf32>
    %c2 = arith.constant 2 : index
    %c0_17 = arith.constant 0 : index
    %c0_18 = arith.constant 0 : index
    %20 = vector.load %arg5[%c2, %c0_17, %c0_18] : memref<4x32x32xf32, #tpu.memory_space<vmem>>, vector<1x32x32xf32>
    %21 = vector.shape_cast %20 : vector<1x32x32xf32> to vector<32x32xf32>
    %cst_19 = arith.constant dense<0.000000e+00> : vector<32x32xf32>
    %22 = tpu.matmul %7, %21, %cst_19 {dimension_numbers = #tpu.dot_dimension_numbers<[1], [0], [0], [1], [0, 0, 1, 1], [], []>} : vector<32x32xf32>, vector<32x32xf32>, vector<32x32xf32> -> vector<32x32xf32>
    %23 = vector.extract_strided_slice %0 {offsets = [2, 0], sizes = [1, 32], strides = [1, 1]} : vector<6x32xf32> to vector<1x32xf32>
    %24 = vector.broadcast %23 : vector<1x32xf32> to vector<32x32xf32>
    %25 = arith.addf %22, %24 : vector<32x32xf32>
    %c0_20 = arith.constant 0 : index
    %c0_21 = arith.constant 0 : index
    %26 = vector.load %arg4[%c0_20, %c0_21] : memref<16x32xf32, #tpu.memory_space<vmem>>, vector<16x32xf32>
    %c3 = arith.constant 3 : index
    %c0_22 = arith.constant 0 : index
    %c0_23 = arith.constant 0 : index
    %27 = vector.load %arg5[%c3, %c0_22, %c0_23] : memref<4x32x32xf32, #tpu.memory_space<vmem>>, vector<1x32x32xf32>
    %28 = vector.shape_cast %27 : vector<1x32x32xf32> to vector<32x32xf32>
    %29 = vector.extract_strided_slice %0 {offsets = [3, 0], sizes = [1, 32], strides = [1, 1]} : vector<6x32xf32> to vector<1x32xf32>
    %30 = vector.extract_strided_slice %13 {offsets = [0, 0], sizes = [16, 8], strides = [1, 1]} : vector<16x32xf32> to vector<16x8xf32>
    %31 = vector.extract_strided_slice %19 {offsets = [0, 0], sizes = [32, 8], strides = [1, 1]} : vector<32x32xf32> to vector<32x8xf32>
    %32 = vector.extract_strided_slice %25 {offsets = [0, 0], sizes = [32, 8], strides = [1, 1]} : vector<32x32xf32> to vector<32x8xf32>
    "tpu.trace_start"() <{level = 10 : i32, message = "rd,td->rt"}> : () -> ()
    %cst_24 = arith.constant dense<0.000000e+00> : vector<16x32xf32>
    %33 = tpu.matmul %30, %31, %cst_24 {dimension_numbers = #tpu.dot_dimension_numbers<[1], [1], [0], [0], [0, 0, 1, 0], [], []>} : vector<16x8xf32>, vector<32x8xf32>, vector<16x32xf32> -> vector<16x32xf32>
    "tpu.trace_stop"() : () -> ()
    %34 = arith.addf %33, %26 : vector<16x32xf32>
    %cst_25 = arith.constant dense<0xFF800000> : vector<16xf32>
    %35 = vector.multi_reduction <maximumf>, %34, %cst_25 [1] : vector<16x32xf32> to vector<16xf32>
    %36 = vector.shape_cast %35 : vector<16xf32> to vector<16x1xf32>
    %37 = vector.broadcast %36 : vector<16x1xf32> to vector<16x32xf32>
    %38 = arith.subf %34, %37 : vector<16x32xf32>
    %39 = math.exp %38 : vector<16x32xf32>
    %cst_26 = arith.constant dense<0.000000e+00> : vector<16xf32>
    %40 = vector.multi_reduction <add>, %39, %cst_26 [1] : vector<16x32xf32> to vector<16xf32>
    %41 = vector.shape_cast %40 : vector<16xf32> to vector<16x1xf32>
    %cst_27 = arith.constant dense<0.000000e+00> : vector<16x8xf32>
    %42 = tpu.matmul %39, %32, %cst_27 {dimension_numbers = #tpu.dot_dimension_numbers<[1], [0], [0], [1], [0, 0, 1, 1], [], []>} : vector<16x32xf32>, vector<32x8xf32>, vector<16x8xf32> -> vector<16x8xf32>
    %43 = vector.broadcast %41 : vector<16x1xf32> to vector<16x8xf32>
    %44 = arith.divf %42, %43 : vector<16x8xf32>
    %45 = vector.extract_strided_slice %28 {offsets = [0, 0], sizes = [8, 32], strides = [1, 1]} : vector<32x32xf32> to vector<8x32xf32>
    %cst_28 = arith.constant dense<0.000000e+00> : vector<16x32xf32>
    %46 = tpu.matmul %44, %45, %cst_28 {dimension_numbers = #tpu.dot_dimension_numbers<[1], [0], [0], [1], [0, 0, 1, 1], [], []>} : vector<16x8xf32>, vector<8x32xf32>, vector<16x32xf32> -> vector<16x32xf32>
    %47 = vector.broadcast %29 : vector<1x32xf32> to vector<16x32xf32>
    %48 = arith.addf %47, %46 : vector<16x32xf32>
    %49 = vector.extract_strided_slice %13 {offsets = [0, 8], sizes = [16, 8], strides = [1, 1]} : vector<16x32xf32> to vector<16x8xf32>
    %50 = vector.extract_strided_slice %19 {offsets = [0, 8], sizes = [32, 8], strides = [1, 1]} : vector<32x32xf32> to vector<32x8xf32>
    %51 = vector.extract_strided_slice %25 {offsets = [0, 8], sizes = [32, 8], strides = [1, 1]} : vector<32x32xf32> to vector<32x8xf32>
    "tpu.trace_start"() <{level = 10 : i32, message = "rd,td->rt"}> : () -> ()
    %cst_29 = arith.constant dense<0.000000e+00> : vector<16x32xf32>
    %52 = tpu.matmul %49, %50, %cst_29 {dimension_numbers = #tpu.dot_dimension_numbers<[1], [1], [0], [0], [0, 0, 1, 0], [], []>} : vector<16x8xf32>, vector<32x8xf32>, vector<16x32xf32> -> vector<16x32xf32>
    "tpu.trace_stop"() : () -> ()
    %53 = arith.addf %52, %26 : vector<16x32xf32>
    %cst_30 = arith.constant dense<0xFF800000> : vector<16xf32>
    %54 = vector.multi_reduction <maximumf>, %53, %cst_30 [1] : vector<16x32xf32> to vector<16xf32>
    %55 = vector.shape_cast %54 : vector<16xf32> to vector<16x1xf32>
    %56 = vector.broadcast %55 : vector<16x1xf32> to vector<16x32xf32>
    %57 = arith.subf %53, %56 : vector<16x32xf32>
    %58 = math.exp %57 : vector<16x32xf32>
    %cst_31 = arith.constant dense<0.000000e+00> : vector<16xf32>
    %59 = vector.multi_reduction <add>, %58, %cst_31 [1] : vector<16x32xf32> to vector<16xf32>
    %60 = vector.shape_cast %59 : vector<16xf32> to vector<16x1xf32>
    %cst_32 = arith.constant dense<0.000000e+00> : vector<16x8xf32>
    %61 = tpu.matmul %58, %51, %cst_32 {dimension_numbers = #tpu.dot_dimension_numbers<[1], [0], [0], [1], [0, 0, 1, 1], [], []>} : vector<16x32xf32>, vector<32x8xf32>, vector<16x8xf32> -> vector<16x8xf32>
    %62 = vector.broadcast %60 : vector<16x1xf32> to vector<16x8xf32>
    %63 = arith.divf %61, %62 : vector<16x8xf32>
    %64 = vector.extract_strided_slice %28 {offsets = [8, 0], sizes = [8, 32], strides = [1, 1]} : vector<32x32xf32> to vector<8x32xf32>
    %cst_33 = arith.constant dense<0.000000e+00> : vector<16x32xf32>
    %65 = tpu.matmul %63, %64, %cst_33 {dimension_numbers = #tpu.dot_dimension_numbers<[1], [0], [0], [1], [0, 0, 1, 1], [], []>} : vector<16x8xf32>, vector<8x32xf32>, vector<16x32xf32> -> vector<16x32xf32>
    %66 = arith.addf %48, %65 : vector<16x32xf32>
    %67 = vector.extract_strided_slice %13 {offsets = [0, 16], sizes = [16, 8], strides = [1, 1]} : vector<16x32xf32> to vector<16x8xf32>
    %68 = vector.extract_strided_slice %19 {offsets = [0, 16], sizes = [32, 8], strides = [1, 1]} : vector<32x32xf32> to vector<32x8xf32>
    %69 = vector.extract_strided_slice %25 {offsets = [0, 16], sizes = [32, 8], strides = [1, 1]} : vector<32x32xf32> to vector<32x8xf32>
    "tpu.trace_start"() <{level = 10 : i32, message = "rd,td->rt"}> : () -> ()
    %cst_34 = arith.constant dense<0.000000e+00> : vector<16x32xf32>
    %70 = tpu.matmul %67, %68, %cst_34 {dimension_numbers = #tpu.dot_dimension_numbers<[1], [1], [0], [0], [0, 0, 1, 0], [], []>} : vector<16x8xf32>, vector<32x8xf32>, vector<16x32xf32> -> vector<16x32xf32>
    "tpu.trace_stop"() : () -> ()
    %71 = arith.addf %70, %26 : vector<16x32xf32>
    %cst_35 = arith.constant dense<0xFF800000> : vector<16xf32>
    %72 = vector.multi_reduction <maximumf>, %71, %cst_35 [1] : vector<16x32xf32> to vector<16xf32>
    %73 = vector.shape_cast %72 : vector<16xf32> to vector<16x1xf32>
    %74 = vector.broadcast %73 : vector<16x1xf32> to vector<16x32xf32>
    %75 = arith.subf %71, %74 : vector<16x32xf32>
    %76 = math.exp %75 : vector<16x32xf32>
    %cst_36 = arith.constant dense<0.000000e+00> : vector<16xf32>
    %77 = vector.multi_reduction <add>, %76, %cst_36 [1] : vector<16x32xf32> to vector<16xf32>
    %78 = vector.shape_cast %77 : vector<16xf32> to vector<16x1xf32>
    %cst_37 = arith.constant dense<0.000000e+00> : vector<16x8xf32>
    %79 = tpu.matmul %76, %69, %cst_37 {dimension_numbers = #tpu.dot_dimension_numbers<[1], [0], [0], [1], [0, 0, 1, 1], [], []>} : vector<16x32xf32>, vector<32x8xf32>, vector<16x8xf32> -> vector<16x8xf32>
    %80 = vector.broadcast %78 : vector<16x1xf32> to vector<16x8xf32>
    %81 = arith.divf %79, %80 : vector<16x8xf32>
    %82 = vector.extract_strided_slice %28 {offsets = [16, 0], sizes = [8, 32], strides = [1, 1]} : vector<32x32xf32> to vector<8x32xf32>
    %cst_38 = arith.constant dense<0.000000e+00> : vector<16x32xf32>
    %83 = tpu.matmul %81, %82, %cst_38 {dimension_numbers = #tpu.dot_dimension_numbers<[1], [0], [0], [1], [0, 0, 1, 1], [], []>} : vector<16x8xf32>, vector<8x32xf32>, vector<16x32xf32> -> vector<16x32xf32>
    %84 = arith.addf %66, %83 : vector<16x32xf32>
    %85 = vector.extract_strided_slice %13 {offsets = [0, 24], sizes = [16, 8], strides = [1, 1]} : vector<16x32xf32> to vector<16x8xf32>
    %86 = vector.extract_strided_slice %19 {offsets = [0, 24], sizes = [32, 8], strides = [1, 1]} : vector<32x32xf32> to vector<32x8xf32>
    %87 = vector.extract_strided_slice %25 {offsets = [0, 24], sizes = [32, 8], strides = [1, 1]} : vector<32x32xf32> to vector<32x8xf32>
    "tpu.trace_start"() <{level = 10 : i32, message = "rd,td->rt"}> : () -> ()
    %cst_39 = arith.constant dense<0.000000e+00> : vector<16x32xf32>
    %88 = tpu.matmul %85, %86, %cst_39 {dimension_numbers = #tpu.dot_dimension_numbers<[1], [1], [0], [0], [0, 0, 1, 0], [], []>} : vector<16x8xf32>, vector<32x8xf32>, vector<16x32xf32> -> vector<16x32xf32>
    "tpu.trace_stop"() : () -> ()
    %89 = arith.addf %88, %26 : vector<16x32xf32>
    %cst_40 = arith.constant dense<0xFF800000> : vector<16xf32>
    %90 = vector.multi_reduction <maximumf>, %89, %cst_40 [1] : vector<16x32xf32> to vector<16xf32>
    %91 = vector.shape_cast %90 : vector<16xf32> to vector<16x1xf32>
    %92 = vector.broadcast %91 : vector<16x1xf32> to vector<16x32xf32>
    %93 = arith.subf %89, %92 : vector<16x32xf32>
    %94 = math.exp %93 : vector<16x32xf32>
    %cst_41 = arith.constant dense<0.000000e+00> : vector<16xf32>
    %95 = vector.multi_reduction <add>, %94, %cst_41 [1] : vector<16x32xf32> to vector<16xf32>
    %96 = vector.shape_cast %95 : vector<16xf32> to vector<16x1xf32>
    %cst_42 = arith.constant dense<0.000000e+00> : vector<16x8xf32>
    %97 = tpu.matmul %94, %87, %cst_42 {dimension_numbers = #tpu.dot_dimension_numbers<[1], [0], [0], [1], [0, 0, 1, 1], [], []>} : vector<16x32xf32>, vector<32x8xf32>, vector<16x8xf32> -> vector<16x8xf32>
    %98 = vector.broadcast %96 : vector<16x1xf32> to vector<16x8xf32>
    %99 = arith.divf %97, %98 : vector<16x8xf32>
    %100 = vector.extract_strided_slice %28 {offsets = [24, 0], sizes = [8, 32], strides = [1, 1]} : vector<32x32xf32> to vector<8x32xf32>
    %cst_43 = arith.constant dense<0.000000e+00> : vector<16x32xf32>
    %101 = tpu.matmul %99, %100, %cst_43 {dimension_numbers = #tpu.dot_dimension_numbers<[1], [0], [0], [1], [0, 0, 1, 1], [], []>} : vector<16x8xf32>, vector<8x32xf32>, vector<16x32xf32> -> vector<16x32xf32>
    %102 = arith.addf %84, %101 : vector<16x32xf32>
    %cst_44 = arith.constant dense<0.000000e+00> : vector<16xf32>
    %103 = vector.multi_reduction <add>, %102, %cst_44 [1] : vector<16x32xf32> to vector<16xf32>
    %104 = vector.shape_cast %103 : vector<16xf32> to vector<16x1xf32>
    %cst_45 = arith.constant 3.200000e+01 : f32
    %105 = vector.broadcast %cst_45 : f32 to vector<16x1xf32>
    %106 = arith.divf %104, %105 : vector<16x1xf32>
    %107 = vector.broadcast %106 : vector<16x1xf32> to vector<16x32xf32>
    %108 = arith.subf %102, %107 : vector<16x32xf32>
    %109 = arith.mulf %108, %108 : vector<16x32xf32>
    %cst_46 = arith.constant dense<0.000000e+00> : vector<16xf32>
    %110 = vector.multi_reduction <add>, %109, %cst_46 [1] : vector<16x32xf32> to vector<16xf32>
    %111 = vector.shape_cast %110 : vector<16xf32> to vector<16x1xf32>
    %cst_47 = arith.constant 3.200000e+01 : f32
    %112 = vector.broadcast %cst_47 : f32 to vector<16x1xf32>
    %113 = arith.divf %111, %112 : vector<16x1xf32>
    %cst_48 = arith.constant 9.99999974E-6 : f32
    %114 = vector.broadcast %cst_48 : f32 to vector<16x1xf32>
    %115 = arith.addf %113, %114 : vector<16x1xf32>
    %116 = math.rsqrt %115 : vector<16x1xf32>
    %117 = vector.broadcast %116 : vector<16x1xf32> to vector<16x32xf32>
    %118 = arith.mulf %108, %117 : vector<16x32xf32>
    %119 = vector.extract_strided_slice %0 {offsets = [4, 0], sizes = [1, 32], strides = [1, 1]} : vector<6x32xf32> to vector<1x32xf32>
    %120 = vector.broadcast %119 : vector<1x32xf32> to vector<16x32xf32>
    %121 = arith.mulf %118, %120 : vector<16x32xf32>
    %122 = vector.extract_strided_slice %0 {offsets = [5, 0], sizes = [1, 32], strides = [1, 1]} : vector<6x32xf32> to vector<1x32xf32>
    %123 = vector.broadcast %122 : vector<1x32xf32> to vector<16x32xf32>
    %124 = arith.addf %121, %123 : vector<16x32xf32>
    %c0_49 = arith.constant 0 : index
    %c0_50 = arith.constant 0 : index
    %125 = vector.load %arg7[%c0_49, %c0_50] : memref<16x32xf32, #tpu.memory_space<vmem>>, vector<16x32xf32>
    tpu.vector_store %arg7[%c0_49, %c0_50], %124 {strides = array<i32>} : memref<16x32xf32, #tpu.memory_space<vmem>>, vector<16x32xf32>,
    return
  }
}

</mosaic_0001>

<bundles_post_ra>
// kernel: tpu_custom_call.1
= control target key start
LH: loop header
LB: loop body
LE: loop exit
PB: predicated region body
PF: predicated region fallthrough
CT: control target
= control target key end

     0   :  { %12 = vsyncpa [#allocation3], 0  ;;  %s2471_s0 = inlined_call_operand.hbm [shape: f32[16,32], index: 0, kind: input, shape index: {}]   ;;  %s2472_s1 = inlined_call_operand.hbm [shape: f32[16,32], index: 1, kind: input, shape index: {}]   ;;  %s2473_s2 = inlined_call_operand.hbm [shape: f32[32,32], index: 2, kind: input, shape index: {}]   ;;  %s2474_s3 = inlined_call_operand.hbm [shape: f32[32,32], index: 3, kind: input, shape index: {}]   ;;  %s2475_s4 = inlined_call_operand.hbm [shape: f32[16,32], index: 4, kind: input, shape index: {}]   ;;  %s2476_s5 = inlined_call_operand.hbm [shape: f32[4,32,32], index: 5, kind: input, shape index: {}]   ;;  %s2477_s6 = inlined_call_operand.vmem [shape: f32[6,32], index: 6, kind: input, shape index: {}]   ;;  %s2478_s7 = inlined_call_operand.hbm [shape: f32[16,32], index: 7, kind: output, shape index: {}]  }
   0x1   :  { %13 = vsyncpa [#allocation6], 0 }
   0x2   :  { %14 = vsyncpa [#allocation9], 0 }
   0x3   :  { %15 = vsyncpa [#allocation12], 0 }
   0x4   :  { %16 = vsyncpa [#allocation4], 0  ;;  %s2154_s24 = smov [#allocation5]   ;;  %s2155_s26 = smov [#allocation8]  }
   0x5   :  { %s34_s25 = sshll.u32 %s2154_s24, 4  ;;  %s58_s27 = sshll.u32 %s2155_s26, 4  ;;  %s35_s25 = int_to_ptr.vmem [resolvable:$true] %s34_s25  ;;  %s59_s27 = int_to_ptr.vmem [resolvable:$true] %s58_s27 }
   0x6   :  { %s2012_s28 = scalar_lea.vmem %s35_s25, 256  ;;  %p2017_p1 = scmp.lt.s32.totalorder %s35_s25, %s35_s25 }
   0x7   :  { %p2013_p0 = scmp.ne.s32.totalorder %s35_s25, %s2012_s28  ;;  %p2018_p2 = scmp.lt.s32.totalorder %s2012_s28, %s2012_s28 }
   0x9   :  { %p2019_p3 = por %p2018_p2, %p2017_p1 }
   0xb   :  { %p2020_p4 = pnand %p2019_p3, %p2013_p0 }
   0xd   :  { %2023 = shalt.err (!%p2020_p4)
}
   0xe   :  { %s2156_s29 = smov 128   ;;  %s2157_s30 = smov 8  }
   0xf   :  { %40 = dma.hbm_to_vmem [thread:$0]  %s2472_s1, 256, %s35_s25, [#allocation6], %s2156_s29, %s2156_s29, %s2157_s30  }
  0x10   :  { %s2032_s10 = scalar_lea.vmem %s59_s27, 512  ;;  %p2037_p6 = scmp.lt.s32.totalorder %s59_s27, %s59_s27 }
  0x11   :  { %p2033_p5 = scmp.ne.s32.totalorder %s59_s27, %s2032_s10  ;;  %p2038_p7 = scmp.lt.s32.totalorder %s2032_s10, %s2032_s10 }
  0x13   :  { %p2039_p8 = por %p2038_p7, %p2037_p6 }
  0x15   :  { %p2040_p9 = pnand %p2039_p8, %p2033_p5 }
  0x17   :  { %2043 = shalt.err (!%p2040_p9)
}
  0x18   :  { %64 = dma.hbm_to_vmem [thread:$0]  %s2474_s3, 512, %s59_s27, [#allocation9], %s2156_s29, %s2156_s29, %s2157_s30  }
  0x19   :  { %s2158_s13 = smov [#allocation2]   ;;  %s2159_s15 = smov [#allocation7]  }
  0x1a   :  { %s22_s14 = sshll.u32 %s2158_s13, 4  ;;  %s46_s16 = sshll.u32 %s2159_s15, 4  ;;  %s23_s14 = int_to_ptr.vmem [resolvable:$true] %s22_s14  ;;  %s47_s16 = int_to_ptr.vmem [resolvable:$true] %s46_s16 }
  0x1b   :  { %s2052_s1 = scalar_lea.vmem %s23_s14, 256  ;;  %p2057_p11 = scmp.lt.s32.totalorder %s23_s14, %s23_s14 }
  0x1c   :  { %p2053_p10 = scmp.ne.s32.totalorder %s23_s14, %s2052_s1  ;;  %p2058_p12 = scmp.lt.s32.totalorder %s2052_s1, %s2052_s1 }
  0x1e   :  { %p2059_p13 = por %p2058_p12, %p2057_p11 }
  0x20   :  { %p2060_p0 = pnand %p2059_p13, %p2053_p10 }
  0x22   :  { %2063 = shalt.err (!%p2060_p0)
}
  0x23   :  { %28 = dma.hbm_to_vmem [thread:$0]  %s2471_s0, 256, %s23_s14, [#allocation3], %s2156_s29, %s2156_s29, %s2157_s30  }
  0x24   :  { %s2072_s3 = scalar_lea.vmem %s47_s16, 512  ;;  %p2077_p2 = scmp.lt.s32.totalorder %s47_s16, %s47_s16 }
  0x25   :  { %p2073_p1 = scmp.ne.s32.totalorder %s47_s16, %s2072_s3  ;;  %p2078_p3 = scmp.lt.s32.totalorder %s2072_s3, %s2072_s3 }
  0x27   :  { %p2079_p4 = por %p2078_p3, %p2077_p2 }
  0x29   :  { %p2080_p5 = pnand %p2079_p4, %p2073_p1 }
  0x2b   :  { %2083 = shalt.err (!%p2080_p5)
}
  0x2c   :  { %52 = dma.hbm_to_vmem [thread:$0]  %s2473_s2, 512, %s47_s16, [#allocation6], %s2156_s29, %s2156_s29, %s2157_s30  }
  0x2d   :  { %s2160_s21 = smov [#allocation10]   ;;  %s2161_s23 = smov [#allocation11]  }
  0x2e   :  { %s70_s22 = sshll.u32 %s2160_s21, 4  ;;  %s82_s24 = sshll.u32 %s2161_s23, 4  ;;  %s71_s22 = int_to_ptr.vmem [resolvable:$true] %s70_s22  ;;  %s83_s24 = int_to_ptr.vmem [resolvable:$true] %s82_s24 }
  0x2f   :  { %s2092_s0 = scalar_lea.vmem %s71_s22, 256  ;;  %p2097_p7 = scmp.lt.s32.totalorder %s71_s22, %s71_s22 }
  0x30   :  { %p2093_p6 = scmp.ne.s32.totalorder %s71_s22, %s2092_s0  ;;  %p2098_p8 = scmp.lt.s32.totalorder %s2092_s0, %s2092_s0 }
  0x32   :  { %p2099_p9 = por %p2098_p8, %p2097_p7 }
  0x34   :  { %p2100_p10 = pnand %p2099_p9, %p2093_p6 }
  0x36   :  { %2103 = shalt.err (!%p2100_p10)
}
  0x37   :  { %76 = dma.hbm_to_vmem [thread:$0]  %s2475_s4, 256, %s71_s22, [#allocation9], %s2156_s29, %s2156_s29, %s2157_s30  }
  0x38   :  { %s2112_s2 = scalar_lea.vmem %s83_s24, 2048  ;;  %p2117_p12 = scmp.lt.s32.totalorder %s83_s24, %s83_s24 }
  0x39   :  { %p2113_p11 = scmp.ne.s32.totalorder %s83_s24, %s2112_s2  ;;  %p2118_p13 = scmp.lt.s32.totalorder %s2112_s2, %s2112_s2 }
  0x3b   :  { %p2119_p0 = por %p2118_p13, %p2117_p12 }
  0x3d   :  { %p2120_p1 = pnand %p2119_p0, %p2113_p11 }
  0x3f   :  { %2123 = shalt.err (!%p2120_p1)
}
  0x40   :  { %88 = dma.hbm_to_vmem [thread:$0]  %s2476_s5, 2048, %s83_s24, [#allocation12], %s2156_s29, %s2156_s29, %s2157_s30  }
  0x41   :  { %2144 = dma.done.wait [#allocation3], 256  }
  0x42   :  { %2145 = vsyncadd [#allocation3], 4294967040 }
  0x43   :  { %2146 = dma.done.wait [#allocation6], 768  }
  0x44   :  { %2147 = vsyncadd [#allocation6], 4294966528 }
  0x45   :  { %2148 = dma.done.wait [#allocation9], 768  }
  0x46   :  { %2149 = vsyncadd [#allocation9], 4294966528 }
  0x47   :  { %2150 = dma.done.wait [#allocation12], 2048  }
  0x48   :  { %2151 = vsyncadd [#allocation12], 4294965248  ;;  %v222_v0 = vld [vmem:[#allocation11 + $0x38] sm:$0xff]  ;;  %v221_v1 = vld [vmem:[#allocation11 + $0x30] sm:$0xff]  ;;  %vm136_vm0 = vcmask 261120   ;;  %v132_v30 = vlaneseq  ;;  %s2162_s8 = smov 120  }
  0x49   :  { %1820 = vmatprep.subr.mxu1 %v222_v0  ;;  %v116_v2 = vld [vmem:[#allocation7] sm:$0xff]  ;;  %v220_v4 = vld [vmem:[#allocation11 + $0x28] sm:$0xff]  ;;  %v117_v6 = vld [vmem:[#allocation7 + $0x8] sm:$0xff]  ;;  %vm437_vm1 = vcmask 64512   ;;  %s2164_s9 = smov 104   ;;  %s2165_s10 = smov [#allocation13]  }
  0x4a   :  { %v120_v3 = vld [vmem:[#allocation8] sm:$0xff]  ;;  %1821 = vmatpush3.msra.mxu1 %v222_v0  ;;  %v121_v7 = vld [vmem:[#allocation8 + $0x8] sm:$0xff]  ;;  %v219_v8 = vld [vmem:[#allocation11 + $0x20] sm:$0xff]  ;;  %v2252_v31 = vshrl.u32 %v132_v30, 7  ;;  %s1662_s11 = sshll.u32 %s2165_s10, 4  ;;  %s1663_s11 = int_to_ptr.vmem [resolvable:$true] %s1662_s11 }
  0x4b   :  { %v124_v5 = vadd.f32 %v120_v3, %v116_v2  ;;  %1822 = vmatprep.subr.mxu1 %v221_v1  ;;  %v118_v9 = vld [vmem:[#allocation7 + $0x10] sm:$0xff]  ;;  %v119_v11 = vld [vmem:[#allocation7 + $0x18] sm:$0xff]  ;;  %v131_v12 = vld [vmem:[#allocation11 + $0x18] sm:$0xff]  ;;  %v125_v14 = vadd.f32 %v121_v7, %v117_v6  ;;  %s2124_s12 = scalar_lea.vmem %s1663_s11, 256  ;;  %p2129_p3 = scmp.lt.s32.totalorder %s1663_s11, %s1663_s11 }
  0x4c   :  { %v122_v10 = vld [vmem:[#allocation8 + $0x10] sm:$0xff]  ;;  %1823 = vmatpush3.msra.mxu1 %v221_v1  ;;  %v130_v13 = vld [vmem:[#allocation11 + $0x10] sm:$0xff]  ;;  %v123_v15 = vld [vmem:[#allocation8 + $0x18] sm:$0xff]  ;;  %1809 = vmatprep.subr.mxu0 %v131_v12  ;;  %v225_v32 = vsub.s32 1, %v2252_v31  ;;  %v134_v35 = vsub.s32 0, %v2252_v31  ;;  %v331_v49 = vsub.s32 2, %v2252_v31  ;;  %p2125_p2 = scmp.ne.s32.totalorder %s1663_s11, %s2124_s12  ;;  %p2130_p4 = scmp.lt.s32.totalorder %s2124_s12, %s2124_s12 }
  0x4d   :  { %1828 = vmatprep.mubr.msk.f32.mxu1 %vm136_vm0, %v124_v5  ;;  %1824 = vmatprep.subr.mxu1 %v220_v4  ;;  %v110_v16 = vld [vmem:[#allocation2] sm:$0xff]  ;;  %v112_v17 = vld [vmem:[#allocation5] sm:$0xff]  ;;  %v126_v18 = vadd.f32 %v122_v10, %v118_v9  ;;  %v129_v19 = vld [vmem:[#allocation11 + $0x8] sm:$0xff]  ;;  %v127_v24 = vadd.f32 %v123_v15, %v119_v11 }
  0x4e   :  { %1825 = vmatpush3.msra.mxu1 %v220_v4  ;;  %1810 = vmatpush3.msra.mxu0 %v131_v12  ;;  %v111_v20 = vld [vmem:[#allocation2 + $0x8] sm:$0xff]  ;;  %v113_v21 = vld [vmem:[#allocation5 + $0x8] sm:$0xff]  ;;  %v114_v22 = vadd.f32 %v112_v17, %v110_v16  ;;  %v128_v23 = vld [vmem:[#allocation11] sm:$0xff]  ;;  %p2131_p5 = por %p2130_p4, %p2129_p3 }
  0x4f   :  { %1826 = vmatprep.subr.mxu1 %v219_v8  ;;  %1811 = vmatprep.subr.mxu0 %v130_v13  ;;  %v115_v25 = vadd.f32 %v113_v21, %v111_v20  ;;  %v328_v26 = vld [vmem:[#allocation11 + $0x58] sm:$0xff]  ;;  %v327_v27 = vld [vmem:[#allocation11 + $0x50] sm:$0xff]  ;;  %v326_v28 = vld [vmem:[#allocation11 + $0x48] sm:$0xff] }
  0x50   :  { %1827 = vmatpush3.msra.mxu1 %v219_v8  ;;  %1812 = vmatpush3.msra.mxu0 %v130_v13  ;;  %v325_v29 = vld [vmem:[#allocation11 + $0x40] sm:$0xff]  ;;  %v2258_v33 = vld [vmem:[%s2477_s6] sm:$0x3f]  ;;  %v2323_v61 = vld [vmem:[#allocation10 + $0x8] sm:$0xff]  ;;  %s2163_s6 = smov 112   ;;  %p2132_p6 = pnand %p2131_p5, %p2125_p2 }
  0x51   :  { %1829 = vmatmul.mubr.msk.f32.vlgmr.msra.gmra.mxu1 %vm136_vm0, %v125_v14  ;;  %1813 = vmatprep.subr.mxu0 %v129_v19  ;;  %v226_v34 = vrot.slane %v2258_v33, %v225_v32  ;;  %v135_v39 = vrot.slane %v2258_v33, %v134_v35  ;;  %v332_v51 = vrot.slane %v2258_v33, %v331_v49  ;;  %v2325_v63 = vld [vmem:[#allocation10] sm:$0xff]  ;;  %v433_v15 = vld [vmem:[#allocation11 + $0x60] sm:$0xff] }
  0x52   :  { %1831 = vmatprep.mubr.msk.f32.mxu1 %vm136_vm0, %v126_v18  ;;  %1814 = vmatpush3.msra.mxu0 %v129_v19 }
  0x53   :  { %1815 = vmatprep.subr.mxu0 %v128_v23  ;;  %1817 = vmatprep.mubr.msk.f32.mxu0 %vm136_vm0, %v114_v22 }
  0x54   :  { %1816 = vmatpush3.msra.mxu0 %v128_v23 }
  0x55   :  { %1832 = vmatmul.mubr.msk.f32.gmra.mxu1 %vm136_vm0, %v127_v24  ;;  %1818 = vmatmul.mubr.msk.f32.vlgmr.msra.gmra.mxu0 %vm136_vm0, %v115_v25 }
  0x56   :  { %1842 = vmatprep.mubr.msk.f32.mxu0 %vm136_vm0, %v116_v2  ;;  %1834 = vmatprep.subr.mxu0 %v328_v26 }
  0x57   :  { %1835 = vmatpush3.msra.mxu0 %v328_v26 }
  0x58   :  { %1836 = vmatprep.subr.mxu0 %v327_v27 }
  0x59   :  { %1837 = vmatpush3.msra.mxu0 %v327_v27 }
  0x5a   :  { %1838 = vmatprep.subr.mxu0 %v326_v28 }
  0x5b   :  { %1839 = vmatpush3.msra.mxu0 %v326_v28 }
  0x5c   :  { %1840 = vmatprep.subr.mxu0 %v325_v29 }
  0x5d   :  { %1841 = vmatpush3.msra.mxu0 %v325_v29 }
  0x5e   :  { %1843 = vmatmul.mubr.msk.f32.vlgmr.msra.gmra.mxu0 %vm136_vm0, %v117_v6 }
  0x5f   :  { %1845 = vmatprep.mubr.msk.f32.mxu0 %vm136_vm0, %v118_v9 }
  0x62   :  { %1846 = vmatmul.mubr.msk.f32.gmra.mxu0 %vm136_vm0, %v119_v11 }
 0x111   :  { %v1830_v36 = vpop.f32.mrf.mxu1 }
 0x112   :  { %v2262_v37 = vadd.f32 %v1830_v36, %v226_v34 }
 0x113   :  { %v305_v38 = vpop.f32.mrf.mxu1 }
 0x114   :  { %727 = vrot.lane.b32.xlu1 %v2262_v37, %s2162_s8  ;;  %v2269_v43 = vadd.f32 %v305_v38, %v226_v34 }
 0x115   :  { %v1833_v40 = vpop.f32.mrf.mxu1  ;;  %v1819_v41 = vpop.f32.mrf.mxu0 }
 0x116   :  { %v2267_v42 = vadd.f32 %v1833_v40, %v226_v34  ;;  %v2283_v48 = vadd.f32 %v1819_v41, %v135_v39 }
 0x117   :  { %v315_v44 = vpop.f32.mrf.mxu1  ;;  %v209_v45 = vpop.f32.mrf.mxu0 }
 0x118   :  { %v2271_v46 = vadd.f32 %v315_v44, %v226_v34  ;;  %731 = vrot.lane.b32.xlu0 %v2267_v42, %s2162_s8  ;;  %1848 = vmatprep.subr.msk.mxu1 %vm437_vm1, %v2267_v42  ;;  %v2277_v47 = vadd.f32 %v209_v45, %v135_v39 }
 0x119   :  { %725 = vrot.lane.b32.xlu1 %v2269_v43, %s2162_s8  ;;  %1849 = vmatpush3.xpose.msk.msra.mxu1 %vm437_vm1, %v2267_v42 }
 0x11a   :  { %1850 = vmatprep.subr.msk.mxu1 %vm437_vm1, %v2271_v46  ;;  %1856 = vmatprep.mubr.msk.f32.mxu1 %vm437_vm1, %v2277_v47 }
 0x11c   :  { %729 = vrot.lane.b32.xlu0 %v2271_v46, %s2162_s8 }
 0x11d   :  { %1851 = vmatpush3.xpose.msk.msra.mxu1 %vm437_vm1, %v2271_v46  ;;  %723 = vrot.lane.b32.xlu1 %v2283_v48, %s2162_s8 }
 0x11e   :  { %1852 = vmatprep.subr.msk.mxu1 %vm437_vm1, %v2262_v37  ;;  %v1844_v50 = vpop.f32.mrf.mxu0 }
 0x11f   :  { %v2331_v6 = vadd.f32 %v1844_v50, %v332_v51 }
 0x120   :  { %721 = vrot.lane.b32.xlu0 %v2277_v47, %s2162_s8  ;;  %v411_v52 = vpop.f32.mrf.mxu0 }
 0x121   :  { %1853 = vmatpush3.xpose.msk.msra.mxu1 %vm437_vm1, %v2262_v37  ;;  %v2335_v8 = vadd.f32 %v411_v52, %v332_v51 }
 0x122   :  { %1854 = vmatprep.subr.msk.mxu1 %vm437_vm1, %v2269_v43  ;;  %v1847_v53 = vpop.f32.mrf.mxu0 }
 0x123   :  { %v2309_v54 = vadd.f32 %v1847_v53, %v332_v51 }
 0x124   :  { %v421_v5 = vpop.f32.mrf.mxu0 }
 0x125   :  { %1855 = vmatpush3.xpose.msk.msra.mxu1 %vm437_vm1, %v2269_v43  ;;  %1859 = vmatprep.subr.mxu0 %v2309_v54  ;;  %v2333_v7 = vadd.f32 %v421_v5, %v332_v51 }
 0x126   :  { %1860 = vmatpush3.msra.mxu0 %v2309_v54 }
 0x127   :  { %1861 = vmatprep.subr.mxu0 %v2333_v7 }
 0x128   :  { %1857 = vmatmul.mubr.msk.f32.vlgmr.msra.gmra.mxu1 %vm437_vm1, %v2283_v48  ;;  %1862 = vmatpush3.msra.mxu0 %v2333_v7 }
 0x129   :  { %1863 = vmatprep.subr.mxu0 %v2331_v6 }
 0x12a   :  { %1864 = vmatpush3.msra.mxu0 %v2331_v6 }
 0x12b   :  { %1865 = vmatprep.subr.mxu0 %v2335_v8 }
 0x12c   :  { %1866 = vmatpush3.msra.mxu0 %v2335_v8 }
 0x12d   :  { %1870 = vmatprep.subr.mxu0 %v433_v15 }
 0x186   :  { %v728_v56 = vpop.permute.xlu1 %727 }
 0x18a   :  { %v732_v55 = vpop.permute.xlu0 %731 }
 0x18b   :  { %1875 = vmatprep.subr.msk.mxu1 %vm437_vm1, %v732_v55  ;;  %v726_v59 = vpop.permute.xlu1 %725 }
 0x18c   :  { %1876 = vmatpush3.xpose.msk.msra.mxu1 %vm437_vm1, %v732_v55 }
 0x18e   :  { %v730_v57 = vpop.permute.xlu0 %729 }
 0x18f   :  { %1877 = vmatprep.subr.msk.mxu1 %vm437_vm1, %v730_v57  ;;  %v724_v60 = vpop.permute.xlu1 %723 }
 0x190   :  { %1878 = vmatpush3.xpose.msk.msra.mxu1 %vm437_vm1, %v730_v57  ;;  %v434_v57 = vld [vmem:[#allocation11 + $0x68] sm:$0xff] }
 0x191   :  { %1879 = vmatprep.subr.msk.mxu1 %vm437_vm1, %v728_v56 }
 0x192   :  { %v722_v58 = vpop.permute.xlu0 %721 }
 0x193   :  { %1883 = vmatprep.mubr.msk.f32.mxu1 %vm437_vm1, %v722_v58 }
 0x194   :  { %1880 = vmatpush3.xpose.msk.msra.mxu1 %vm437_vm1, %v728_v56 }
 0x195   :  { %1881 = vmatprep.subr.msk.mxu1 %vm437_vm1, %v726_v59 }
 0x198   :  { %1882 = vmatpush3.xpose.msk.msra.mxu1 %vm437_vm1, %v726_v59 }
 0x19b   :  { %1884 = vmatmul.mubr.msk.f32.vlgmr.msra.gmra.mxu1 %vm437_vm1, %v724_v60 }
 0x1e8   :  { %v1858_v62 = vpop.f32.mrf.mxu1 }
 0x1e9   :  { %v528_v0 = vadd.f32 %v1858_v62, %v2323_v61 }
 0x1ea   :  { %v522_v1 = vpop.f32.mrf.mxu1 }
 0x1eb   :  { %v523_v2 = vadd.f32 %v522_v1, %v2325_v63  ;;  %v534_v3 = vsel %vm136_vm0, %v528_v0, -inf }
 0x1ec   :  { %535 = vmax.xlane.f32.xlu1 %v534_v3 }
 0x1ed   :  { %v531_v4 = vsel %vm136_vm0, %v523_v2, -inf }
 0x1ee   :  { %532 = vmax.xlane.f32.xlu0 %v531_v4 }
 0x1fd   :  { %848 = vrot.lane.b32.xlu1 %v2309_v54, %s2162_s8 }
 0x25b   :  { %v1885_v9 = vpop.f32.mrf.mxu1 }
 0x25c   :  { %v817_v10 = vadd.f32 %v1885_v9, %v2323_v61 }
 0x25d   :  { %v811_v11 = vpop.f32.mrf.mxu1 }
 0x25e   :  { %v812_v12 = vadd.f32 %v811_v11, %v2325_v63  ;;  %v823_v13 = vsel %vm136_vm0, %v817_v10, -inf }
 0x25f   :  { %824 = vmax.xlane.f32.xlu0 %v823_v13 }
 0x260   :  { %v820_v14 = vsel %vm136_vm0, %v812_v12, -inf }
 0x261   :  { %821 = vmax.xlane.f32.xlu1 %v820_v14 }
 0x272   :  { %844 = vrot.lane.b32.xlu1 %v2331_v6, %s2162_s8 }
 0x275   :  { %v536_v16 = vpop.xlane.xlu1 %535 }
 0x276   :  { %v538_v17 = vsub.f32 %v528_v0, %v536_v16  ;;  %842 = vrot.lane.b32.xlu1 %v2335_v8, %s2162_s8 }
 0x277   :  { %v533_v18 = vpop.xlane.xlu0 %532 }
 0x278   :  { %v541_v19 = vmul.f32 1.442695, %v538_v17  ;;  %v537_v20 = vsub.f32 %v523_v2, %v533_v18  ;;  %v717_v17 = vsub.s32 3, %v2252_v31 }
 0x279   :  { %v849_v26 = vpop.permute.xlu1 %848 }
 0x27a   :  { %1968 = vpow2.f32 %v541_v19  ;;  %v539_v21 = vmul.f32 1.442695, %v537_v20  ;;  %v718_v18 = vrot.slane %v2258_v33, %v717_v17 }
 0x27c   :  { %1970 = vpow2.f32 %v539_v21 }
 0x287   :  { %v1969_v22 = vpop.eup %1968 }
 0x288   :  { %v546_v23 = vsel %vm136_vm0, %v1969_v22, 0.0 }
 0x289   :  { %v1971_v24 = vpop.eup %1970  ;;  %547 = vadd.xlane.f32.xlu0 %v546_v23 }
 0x28a   :  { %1867 = vmatprep.mubr.msk.f32.mxu0 %vm136_vm0, %v1971_v24  ;;  %v543_v25 = vsel %vm136_vm0, %v1971_v24, 0.0 }
 0x28b   :  { %1868 = vmatmul.mubr.msk.f32.vlgmr.msra.gmra.mxu0 %vm136_vm0, %v1969_v22 }
 0x28c   :  { %1871 = vmatpush3.msra.mxu0 %v433_v15 }
 0x28d   :  { %544 = vadd.xlane.f32.xlu0 %v543_v25  ;;  %1886 = vmatprep.subr.mxu0 %v849_v26 }
 0x2a3   :  { %846 = vrot.lane.b32.xlu0 %v2333_v7, %s2162_s8 }
 0x2e8   :  { %v825_v27 = vpop.xlane.xlu0 %824 }
 0x2e9   :  { %v827_v28 = vsub.f32 %v817_v10, %v825_v27 }
 0x2ea   :  { %v822_v29 = vpop.xlane.xlu1 %821 }
 0x2eb   :  { %v830_v30 = vmul.f32 1.442695, %v827_v28  ;;  %v826_v32 = vsub.f32 %v812_v12, %v822_v29 }
 0x2ed   :  { %1972 = vpow2.f32 %v830_v30  ;;  %v828_v34 = vmul.f32 1.442695, %v826_v32 }
 0x2ee   :  { %v845_v53 = vpop.permute.xlu1 %844 }
 0x2ef   :  { %1974 = vpow2.f32 %v828_v34 }
 0x2f2   :  { %v843_v56 = vpop.permute.xlu1 %842 }
 0x2fa   :  { %v1973_v35 = vpop.eup %1972 }
 0x2fb   :  { %v835_v36 = vsel %vm136_vm0, %v1973_v35, 0.0 }
 0x2fc   :  { %v1975_v38 = vpop.eup %1974  ;;  %836 = vadd.xlane.f32.xlu1 %v835_v36 }
 0x2fd   :  { %v832_v39 = vsel %vm136_vm0, %v1975_v38, 0.0 }
 0x2fe   :  { %833 = vadd.xlane.f32.xlu0 %v832_v39 }
 0x30d   :  { %1030 = vrot.lane.b32.xlu1 %v2271_v46, %s2163_s6 }
 0x311   :  { %1026 = vrot.lane.b32.xlu1 %v2269_v43, %s2163_s6 }
 0x312   :  { %v548_v40 = vpop.xlane.xlu0 %547 }
 0x314   :  { %1032 = vrot.lane.b32.xlu0 %v2267_v42, %s2163_s6 }
 0x315   :  { %1024 = vrot.lane.b32.xlu1 %v2283_v48, %s2163_s6 }
 0x316   :  { %v545_v41 = vpop.xlane.xlu0 %544 }
 0x317   :  { %1976 = vrcp.f32 %v545_v41 }
 0x318   :  { %1028 = vrot.lane.b32.xlu0 %v2262_v37, %s2163_s6  ;;  %1978 = vrcp.f32 %v548_v40 }
 0x319   :  { %1143 = vrot.lane.b32.xlu1 %v2333_v7, %s2163_s6 }
 0x31a   :  { %v847_v55 = vpop.permute.xlu0 %846 }
 0x31c   :  { %1022 = vrot.lane.b32.xlu0 %v2277_v47, %s2163_s6 }
 0x320   :  { %1145 = vrot.lane.b32.xlu0 %v2309_v54, %s2163_s6 }
 0x324   :  { %v1977_v45 = vpop.eup %1976 }
 0x325   :  { %v1979_v50 = vpop.eup %1978 }
 0x34b   :  { %v1869_v44 = vpop.f32.mrf.mxu0 }
 0x34c   :  { %v633_v52 = vmul.f32 %v1979_v50, %v1869_v44 }
 0x34d   :  { %v621_v49 = vpop.f32.mrf.mxu0 }
 0x34e   :  { %v631_v51 = vmul.f32 %v1977_v45, %v621_v49 }
 0x350   :  { %1872 = vmatprep.mubr.msk.f32.mxu0 %vm437_vm1, %v631_v51  ;;  %v435_v51 = vld [vmem:[#allocation11 + $0x70] sm:$0xff] }
 0x351   :  { %1873 = vmatmul.mubr.msk.f32.vlgmr.msra.gmra.mxu0 %vm437_vm1, %v633_v52 }
 0x352   :  { %1887 = vmatpush3.msra.mxu0 %v849_v26  ;;  %1894 = vmatprep.mubr.msk.f32.mxu0 %vm136_vm0, %v1975_v38 }
 0x353   :  { %1888 = vmatprep.subr.mxu0 %v847_v55 }
 0x354   :  { %1889 = vmatpush3.msra.mxu0 %v847_v55 }
 0x355   :  { %1890 = vmatprep.subr.mxu0 %v845_v53 }
 0x356   :  { %1891 = vmatpush3.msra.mxu0 %v845_v53 }
 0x357   :  { %1892 = vmatprep.subr.mxu0 %v843_v56 }
 0x358   :  { %1893 = vmatpush3.msra.mxu0 %v843_v56 }
 0x359   :  { %1895 = vmatmul.mubr.msk.f32.vlgmr.msra.gmra.mxu0 %vm136_vm0, %v1973_v35  ;;  %1897 = vmatprep.subr.mxu0 %v434_v57 }
 0x35a   :  { %1898 = vmatpush3.msra.mxu0 %v434_v57 }
 0x385   :  { %v837_v58 = vpop.xlane.xlu1 %836 }
 0x387   :  { %v834_v59 = vpop.xlane.xlu0 %833 }
 0x388   :  { %1980 = vrcp.f32 %v834_v59 }
 0x389   :  { %v1031_v60 = vpop.permute.xlu1 %1030  ;;  %1982 = vrcp.f32 %v837_v58 }
 0x38b   :  { %v1033_v62 = vpop.permute.xlu0 %1032 }
 0x38c   :  { %1902 = vmatprep.subr.msk.mxu0 %vm437_vm1, %v1033_v62 }
 0x38d   :  { %v1027_v0 = vpop.permute.xlu1 %1026 }
 0x38f   :  { %v1029_v1 = vpop.permute.xlu0 %1028 }
 0x391   :  { %v1025_v2 = vpop.permute.xlu1 %1024 }
 0x393   :  { %v1023_v3 = vpop.permute.xlu0 %1022 }
 0x395   :  { %v1144_v5 = vpop.permute.xlu1 %1143  ;;  %v1981_v12 = vpop.eup %1980 }
 0x396   :  { %v1983_v14 = vpop.eup %1982 }
 0x397   :  { %v1146_v4 = vpop.permute.xlu0 %1145 }
 0x398   :  { %1913 = vmatprep.subr.mxu1 %v1146_v4 }
 0x399   :  { %1914 = vmatpush3.msra.mxu1 %v1146_v4 }
 0x39a   :  { %1915 = vmatprep.subr.mxu1 %v1144_v5 }
 0x39b   :  { %1916 = vmatpush3.msra.mxu1 %v1144_v5 }
 0x411   :  { %v1874_v9 = vpop.f32.mrf.mxu0 }
 0x412   :  { %v720_v19 = vadd.f32 %v1874_v9, %v718_v18 }
 0x413   :  { %v706_v10 = vpop.f32.mrf.mxu0 }
 0x414   :  { %v719_v21 = vadd.f32 %v718_v18, %v706_v10 }
 0x419   :  { %v1896_v11 = vpop.f32.mrf.mxu0 }
 0x41a   :  { %v938_v16 = vmul.f32 %v1983_v14, %v1896_v11 }
 0x41b   :  { %v926_v13 = vpop.f32.mrf.mxu0 }
 0x41c   :  { %v936_v15 = vmul.f32 %v1981_v12, %v926_v13 }
 0x41e   :  { %1899 = vmatprep.mubr.msk.f32.mxu0 %vm437_vm1, %v936_v15 }
 0x41f   :  { %1900 = vmatmul.mubr.msk.f32.vlgmr.msra.gmra.mxu0 %vm437_vm1, %v938_v16 }
 0x420   :  { %1903 = vmatpush3.xpose.msk.msra.mxu0 %vm437_vm1, %v1033_v62  ;;  %1910 = vmatprep.mubr.msk.f32.mxu0 %vm437_vm1, %v1023_v3 }
 0x421   :  { %1904 = vmatprep.subr.msk.mxu0 %vm437_vm1, %v1031_v60 }
 0x424   :  { %1905 = vmatpush3.xpose.msk.msra.mxu0 %vm437_vm1, %v1031_v60 }
 0x425   :  { %1906 = vmatprep.subr.msk.mxu0 %vm437_vm1, %v1029_v1 }
 0x428   :  { %1907 = vmatpush3.xpose.msk.msra.mxu0 %vm437_vm1, %v1029_v1 }
 0x429   :  { %1908 = vmatprep.subr.msk.mxu0 %vm437_vm1, %v1027_v0 }
 0x42c   :  { %1909 = vmatpush3.xpose.msk.msra.mxu0 %vm437_vm1, %v1027_v0 }
 0x42f   :  { %1911 = vmatmul.mubr.msk.f32.vlgmr.msra.gmra.mxu0 %vm437_vm1, %v1025_v2 }
 0x4df   :  { %v1901_v20 = vpop.f32.mrf.mxu0 }
 0x4e0   :  { %v2395_v22 = vadd.f32 %v1901_v20, %v720_v19  ;;  %v436_v20 = vld [vmem:[#allocation11 + $0x78] sm:$0xff] }
 0x4e1   :  { %v1011_v23 = vpop.f32.mrf.mxu0 }
 0x4e2   :  { %v2397_v24 = vadd.f32 %v1011_v23, %v719_v21 }
 0x4ef   :  { %v1912_v25 = vpop.f32.mrf.mxu0 }
 0x4f0   :  { %v1118_v26 = vadd.f32 %v1912_v25, %v2323_v61 }
 0x4f1   :  { %v1112_v27 = vpop.f32.mrf.mxu0 }
 0x4f2   :  { %v1113_v28 = vadd.f32 %v1112_v27, %v2325_v63  ;;  %v1124_v29 = vsel %vm136_vm0, %v1118_v26, -inf }
 0x4f3   :  { %1125 = vmax.xlane.f32.xlu1 %v1124_v29 }
 0x4f4   :  { %v1121_v30 = vsel %vm136_vm0, %v1113_v28, -inf }
 0x4f5   :  { %1122 = vmax.xlane.f32.xlu0 %v1121_v30 }
 0x504   :  { %1139 = vrot.lane.b32.xlu1 %v2335_v8, %s2163_s6 }
 0x50b   :  { %1141 = vrot.lane.b32.xlu0 %v2331_v6, %s2163_s6 }
 0x57c   :  { %v1126_v32 = vpop.xlane.xlu1 %1125 }
 0x57d   :  { %v1128_v34 = vsub.f32 %v1118_v26, %v1126_v32 }
 0x57e   :  { %v1123_v35 = vpop.xlane.xlu0 %1122 }
 0x57f   :  { %v1131_v36 = vmul.f32 1.442695, %v1128_v34  ;;  %v1127_v38 = vsub.f32 %v1113_v28, %v1123_v35 }
 0x580   :  { %v1140_v41 = vpop.permute.xlu1 %1139 }
 0x581   :  { %1984 = vpow2.f32 %v1131_v36  ;;  %v1129_v39 = vmul.f32 1.442695, %v1127_v38 }
 0x582   :  { %v1142_v40 = vpop.permute.xlu0 %1141 }
 0x583   :  { %1986 = vpow2.f32 %v1129_v39  ;;  %1917 = vmatprep.subr.mxu1 %v1142_v40 }
 0x584   :  { %1918 = vmatpush3.msra.mxu1 %v1142_v40 }
 0x585   :  { %1919 = vmatprep.subr.mxu1 %v1140_v41 }
 0x586   :  { %1920 = vmatpush3.msra.mxu1 %v1140_v41 }
 0x587   :  { %1924 = vmatprep.subr.mxu1 %v435_v51 }
 0x58e   :  { %v1985_v44 = vpop.eup %1984 }
 0x58f   :  { %v1136_v45 = vsel %vm136_vm0, %v1985_v44, 0.0 }
 0x590   :  { %v1987_v49 = vpop.eup %1986  ;;  %1137 = vadd.xlane.f32.xlu1 %v1136_v45 }
 0x591   :  { %1921 = vmatprep.mubr.msk.f32.mxu1 %vm136_vm0, %v1987_v49  ;;  %v1133_v50 = vsel %vm136_vm0, %v1987_v49, 0.0 }
 0x592   :  { %1134 = vadd.xlane.f32.xlu0 %v1133_v50  ;;  %1922 = vmatmul.mubr.msk.f32.vlgmr.msra.gmra.mxu1 %vm136_vm0, %v1985_v44 }
 0x593   :  { %1925 = vmatpush3.msra.mxu1 %v435_v51 }
 0x5a1   :  { %1327 = vrot.lane.b32.xlu1 %v2271_v46, %s2164_s9 }
 0x5a5   :  { %1323 = vrot.lane.b32.xlu1 %v2269_v43, %s2164_s9 }
 0x5a8   :  { %1329 = vrot.lane.b32.xlu0 %v2267_v42, %s2164_s9 }
 0x5a9   :  { %1321 = vrot.lane.b32.xlu1 %v2283_v48, %s2164_s9 }
 0x5ac   :  { %1325 = vrot.lane.b32.xlu0 %v2262_v37, %s2164_s9 }
 0x5ad   :  { %1440 = vrot.lane.b32.xlu1 %v2333_v7, %s2164_s9 }
 0x5b0   :  { %1319 = vrot.lane.b32.xlu0 %v2277_v47, %s2164_s9 }
 0x5b4   :  { %1442 = vrot.lane.b32.xlu0 %v2309_v54, %s2164_s9 }
 0x619   :  { %v1138_v46 = vpop.xlane.xlu1 %1137 }
 0x61b   :  { %v1135_v43 = vpop.xlane.xlu0 %1134 }
 0x61c   :  { %1988 = vrcp.f32 %v1135_v43 }
 0x61d   :  { %v1328_v52 = vpop.permute.xlu1 %1327  ;;  %1990 = vrcp.f32 %v1138_v46 }
 0x61f   :  { %v1330_v53 = vpop.permute.xlu0 %1329 }
 0x620   :  { %1929 = vmatprep.subr.msk.mxu1 %vm437_vm1, %v1330_v53 }
 0x621   :  { %v1324_v42 = vpop.permute.xlu1 %1323 }
 0x623   :  { %v1326_v48 = vpop.permute.xlu0 %1325 }
 0x625   :  { %v1322_v55 = vpop.permute.xlu1 %1321 }
 0x627   :  { %v1320_v56 = vpop.permute.xlu0 %1319 }
 0x629   :  { %v1441_v57 = vpop.permute.xlu1 %1440  ;;  %v1989_v54 = vpop.eup %1988 }
 0x62a   :  { %v1991_v58 = vpop.eup %1990 }
 0x62b   :  { %v1443_v37 = vpop.permute.xlu0 %1442 }
 0x62c   :  { %1940 = vmatprep.subr.mxu0 %v1443_v37 }
 0x62d   :  { %1941 = vmatpush3.msra.mxu0 %v1443_v37  ;;  %v1651_v37 = vsub.s32 5, %v2252_v31 }
 0x62e   :  { %1942 = vmatprep.subr.mxu0 %v1441_v57 }
 0x62f   :  { %1943 = vmatpush3.msra.mxu0 %v1441_v57 }
 0x652   :  { %v1923_v47 = vpop.f32.mrf.mxu1 }
 0x653   :  { %v1235_v60 = vmul.f32 %v1991_v58, %v1923_v47 }
 0x654   :  { %v1223_v7 = vpop.f32.mrf.mxu1 }
 0x655   :  { %v1233_v59 = vmul.f32 %v1989_v54, %v1223_v7  ;;  %v1652_v7 = vrot.slane %v2258_v33, %v1651_v37 }
 0x657   :  { %1926 = vmatprep.mubr.msk.f32.mxu1 %vm437_vm1, %v1233_v59 }
 0x658   :  { %1927 = vmatmul.mubr.msk.f32.vlgmr.msra.gmra.mxu1 %vm437_vm1, %v1235_v60 }
 0x659   :  { %1930 = vmatpush3.xpose.msk.msra.mxu1 %vm437_vm1, %v1330_v53  ;;  %1937 = vmatprep.mubr.msk.f32.mxu1 %vm437_vm1, %v1320_v56  ;;  %v1645_v56 = vsub.s32 4, %v2252_v31 }
 0x65a   :  { %1931 = vmatprep.subr.msk.mxu1 %vm437_vm1, %v1328_v52 }
 0x65b   :  { %v1646_v57 = vrot.slane %v2258_v33, %v1645_v56 }
 0x65d   :  { %1932 = vmatpush3.xpose.msk.msra.mxu1 %vm437_vm1, %v1328_v52 }
 0x65e   :  { %1933 = vmatprep.subr.msk.mxu1 %vm437_vm1, %v1326_v48 }
 0x661   :  { %1934 = vmatpush3.xpose.msk.msra.mxu1 %vm437_vm1, %v1326_v48 }
 0x662   :  { %1935 = vmatprep.subr.msk.mxu1 %vm437_vm1, %v1324_v42 }
 0x665   :  { %1936 = vmatpush3.xpose.msk.msra.mxu1 %vm437_vm1, %v1324_v42 }
 0x668   :  { %1938 = vmatmul.mubr.msk.f32.vlgmr.msra.gmra.mxu1 %vm437_vm1, %v1322_v55 }
 0x718   :  { %v1928_v62 = vpop.f32.mrf.mxu1 }
 0x719   :  { %v1318_v0 = vadd.f32 %v1928_v62, %v2395_v22 }
 0x71a   :  { %v1308_v1 = vpop.f32.mrf.mxu1 }
 0x71b   :  { %v1317_v2 = vadd.f32 %v1308_v1, %v2397_v24 }
 0x728   :  { %v1939_v3 = vpop.f32.mrf.mxu1 }
 0x729   :  { %v1415_v4 = vadd.f32 %v1939_v3, %v2323_v61 }
 0x72a   :  { %v1409_v5 = vpop.f32.mrf.mxu1 }
 0x72b   :  { %v1410_v9 = vadd.f32 %v1409_v5, %v2325_v63  ;;  %v1421_v10 = vsel %vm136_vm0, %v1415_v4, -inf }
 0x72c   :  { %1422 = vmax.xlane.f32.xlu1 %v1421_v10 }
 0x72d   :  { %v1418_v11 = vsel %vm136_vm0, %v1410_v9, -inf }
 0x72e   :  { %1419 = vmax.xlane.f32.xlu0 %v1418_v11 }
 0x73d   :  { %1436 = vrot.lane.b32.xlu1 %v2335_v8, %s2164_s9 }
 0x744   :  { %1438 = vrot.lane.b32.xlu0 %v2331_v6, %s2164_s9 }
 0x7b5   :  { %v1423_v12 = vpop.xlane.xlu1 %1422 }
 0x7b6   :  { %v1425_v13 = vsub.f32 %v1415_v4, %v1423_v12 }
 0x7b7   :  { %v1420_v14 = vpop.xlane.xlu0 %1419 }
 0x7b8   :  { %v1428_v15 = vmul.f32 1.442695, %v1425_v13  ;;  %v1424_v61 = vsub.f32 %v1410_v9, %v1420_v14 }
 0x7b9   :  { %v1437_v17 = vpop.permute.xlu1 %1436 }
 0x7ba   :  { %1992 = vpow2.f32 %v1428_v15  ;;  %v1426_v16 = vmul.f32 1.442695, %v1424_v61 }
 0x7bb   :  { %v1439_v63 = vpop.permute.xlu0 %1438 }
 0x7bc   :  { %1994 = vpow2.f32 %v1426_v16  ;;  %1944 = vmatprep.subr.mxu0 %v1439_v63 }
 0x7bd   :  { %1945 = vmatpush3.msra.mxu0 %v1439_v63 }
 0x7be   :  { %1946 = vmatprep.subr.mxu0 %v1437_v17 }
 0x7bf   :  { %1947 = vmatpush3.msra.mxu0 %v1437_v17 }
 0x7c0   :  { %1951 = vmatprep.subr.mxu0 %v436_v20 }
 0x7c7   :  { %v1993_v18 = vpop.eup %1992 }
 0x7c8   :  { %v1433_v8 = vsel %vm136_vm0, %v1993_v18, 0.0 }
 0x7c9   :  { %v1995_v19 = vpop.eup %1994  ;;  %1434 = vadd.xlane.f32.xlu1 %v1433_v8 }
 0x7ca   :  { %1948 = vmatprep.mubr.msk.f32.mxu0 %vm136_vm0, %v1995_v19  ;;  %v1430_v6 = vsel %vm136_vm0, %v1995_v19, 0.0 }
 0x7cb   :  { %1431 = vadd.xlane.f32.xlu0 %v1430_v6  ;;  %1949 = vmatmul.mubr.msk.f32.vlgmr.msra.gmra.mxu0 %vm136_vm0, %v1993_v18 }
 0x7cc   :  { %1952 = vmatpush3.msra.mxu0 %v436_v20 }
 0x852   :  { %v1435_v22 = vpop.xlane.xlu1 %1434 }
 0x854   :  { %v1432_v21 = vpop.xlane.xlu0 %1431 }
 0x855   :  { %1996 = vrcp.f32 %v1432_v21 }
 0x856   :  { %1998 = vrcp.f32 %v1435_v22 }
 0x862   :  { %v1997_v24 = vpop.eup %1996 }
 0x863   :  { %v1999_v26 = vpop.eup %1998 }
 0x88b   :  { %v1950_v23 = vpop.f32.mrf.mxu0 }
 0x88c   :  { %v1532_v28 = vmul.f32 %v1999_v26, %v1950_v23 }
 0x88d   :  { %v1520_v25 = vpop.f32.mrf.mxu0 }
 0x88e   :  { %v1530_v27 = vmul.f32 %v1997_v24, %v1520_v25 }
 0x890   :  { %1953 = vmatprep.mubr.msk.f32.mxu0 %vm437_vm1, %v1530_v27 }
 0x891   :  { %1954 = vmatmul.mubr.msk.f32.vlgmr.msra.gmra.mxu0 %vm437_vm1, %v1532_v28 }
 0x951   :  { %v1955_v29 = vpop.f32.mrf.mxu0 }
 0x952   :  { %v1615_v34 = vadd.f32 %v1955_v29, %v1318_v0 }
 0x953   :  { %v1605_v30 = vpop.f32.mrf.mxu0 }
 0x954   :  { %v1614_v32 = vadd.f32 %v1605_v30, %v1317_v2  ;;  %v1619_v36 = vsel %vm136_vm0, %v1615_v34, 0.0 }
 0x956   :  { %v1616_v35 = vsel %vm136_vm0, %v1614_v32, 0.0 }
 0x957   :  { %1617 = vadd.xlane.f32.xlu0 %v1616_v35 }
 0x95b   :  { %1620 = vadd.xlane.f32.xlu0 %v1619_v36 }
 0x9e0   :  { %v1618_v38 = vpop.xlane.xlu0 %1617 }
 0x9e1   :  { %v1623_v39 = vmul.f32 0.03125, %v1618_v38 }
 0x9e3   :  { %v1625_v40 = vsub.f32 %v1614_v32, %v1623_v39 }
 0x9e4   :  { %v1621_v41 = vpop.xlane.xlu0 %1620 }
 0x9e5   :  { %v1624_v44 = vmul.f32 0.03125, %v1621_v41  ;;  %v1627_v45 = vmul.f32 %v1625_v40, %v1625_v40 }
 0x9e7   :  { %v1626_v49 = vsub.f32 %v1615_v34, %v1624_v44  ;;  %v1629_v50 = vsel %vm136_vm0, %v1627_v45, 0.0 }
 0x9e8   :  { %1630 = vadd.xlane.f32.xlu1 %v1629_v50 }
 0x9e9   :  { %v1628_v51 = vmul.f32 %v1626_v49, %v1626_v49 }
 0x9eb   :  { %v1632_v46 = vsel %vm136_vm0, %v1628_v51, 0.0 }
 0x9ec   :  { %1633 = vadd.xlane.f32.xlu0 %v1632_v46 }
 0xa71   :  { %v1631_v43 = vpop.xlane.xlu1 %1630 }
 0xa72   :  { %v1635_v52 = vmul.f32 0.03125, %v1631_v43 }
 0xa74   :  { %v1637_v53 = vadd.f32 1e-05, %v1635_v52 }
 0xa75   :  { %v1634_v42 = vpop.xlane.xlu0 %1633 }
 0xa76   :  { %2000 = vrsqrt.f32 %v1637_v53  ;;  %v1636_v48 = vmul.f32 0.03125, %v1634_v42 }
 0xa78   :  { %v1638_v55 = vadd.f32 1e-05, %v1636_v48 }
 0xa7a   :  { %2002 = vrsqrt.f32 %v1638_v55 }
 0xa83   :  { %v2001_v47 = vpop.eup %2000 }
 0xa84   :  { %v1641_v54 = vmul.f32 %v2001_v47, %v1625_v40 }
 0xa86   :  { %v1647_v58 = vmul.f32 %v1646_v57, %v1641_v54 }
 0xa87   :  { %v2003_v59 = vpop.eup %2002 }
 0xa88   :  { %v1642_v60 = vmul.f32 %v2003_v59, %v1626_v49  ;;  %v1653_v62 = vadd.f32 %v1652_v7, %v1647_v58 }
 0xa8a   :  { %v1648_v0 = vmul.f32 %v1646_v57, %v1642_v60  ;;  %1655 = vst.msk [vmem:[#allocation13] sm:$0xff] %vm136_vm0, %v1653_v62 }
 0xa8c   :  { %v1654_v1 = vadd.f32 %v1652_v7, %v1648_v0 }
 0xa8e   :  { %1656 = vst.msk [vmem:[#allocation13 + $0x8] sm:$0xff] %vm136_vm0, %v1654_v1 }
 0xa8f   :  { %2135 = shalt.err (!%p2132_p6)
}
 0xa90   :  { %1668 = dma.vmem_to_hbm [thread:$0]  %s1663_s11, 256, %s2478_s7, [#allocation4], %s2156_s29, %s2156_s29, %s2157_s30  }
 0xa91   :  { %2152 = dma.done.wait [#allocation4], 256  }
 0xa92   :  { %2153 = vsyncadd [#allocation4], 4294967040 }
 0xa93   :  { %1672 = vsyncpa [#allocation3], 1 }
 0xa94   :  { %1673 = vsyncpa [#allocation6], 1 }
 0xa95   :  { %1674 = vsyncpa [#allocation9], 1 }
 0xa96   :  { %1675 = vsyncpa [#allocation12], 1 }
 0xa97   :  { %1676 = vsyncpa [#allocation4], 1 }

</bundles_post_ra>
